<compile_context>
chip_gen: v6e
topology: v6e:2x2x1
jax: 0.10.0
libtpu: 0.0.40
codegen_flags: <defaults>
</compile_context>

<pallas_src>
import functools

import jax
import jax.numpy as jnp
from jax.experimental import pallas as pl
from jax.experimental.pallas import tpu as pltpu

INPUT_SIZE = 11


def lr_kernel(x_ref, w_ref, b_ref, o_ref):
    # x_ref: (TILE_B, D) VMEM (natural torch layout)
    # w_ref: (D, 1) VMEM      b_ref: (1,) SMEM
    # o_ref: (1, TILE_B) VMEM (lane-dense output)
    xt = jnp.transpose(x_ref[...])                          # (D, TILE_B): XLU relayout
    z = jnp.sum(xt * w_ref[...], axis=0, keepdims=True)     # VPU mul + sublane reduce
    z = z + b_ref[0]                                        # scalar bias from SMEM
    o_ref[...] = 0.5 * jnp.tanh(0.5 * z) + 0.5              # single EUP transcendental


def _round_up(n, m):
    return ((n + m - 1) // m) * m


@functools.partial(jax.jit, static_argnames=("tile_b",))
def lr_forward(x, w_t, b, *, tile_b=16384):
    """x: [B, D] f32 (natural layout), w_t: [D, 1] f32, b: [1] f32.

    Returns [B, 1] f32, matching torch: sigmoid(x @ w_t + b).
    """
    B, D = x.shape

    # Lane-granular batch tile.  For B > 128, guarantee >= 2 grid steps so the
    # v7x megacore split has work for both TensorCores; never exceed tile_b.
    tile_b = max(128, (tile_b // 128) * 128)
    if B <= 128:
        tile = B                                   # single block == full array dims
    else:
        tile = min(tile_b, _round_up(pl.cdiv(B, 2), 128))

    grid = (pl.cdiv(B, tile),)                     # ragged last block: Pallas masks it

    out = pl.pallas_call(
        lr_kernel,
        out_shape=jax.ShapeDtypeStruct((1, B), jnp.float32),
        grid=grid,
        in_specs=[
            pl.BlockSpec((tile, D), lambda i: (i, 0)),            # natural-layout x tiles
            pl.BlockSpec((D, 1), lambda i: (0, 0)),               # weight, resident
            pl.BlockSpec(memory_space=pltpu.MemorySpace.SMEM),    # bias scalar in SMEM
        ],
        out_specs=pl.BlockSpec((1, tile), lambda i: (0, i)),      # lane-dense output slab
        compiler_params=pltpu.CompilerParams(
            dimension_semantics=("parallel",),
        ),
        cost_estimate=pl.CostEstimate(
            flops=23 * B, transcendentals=B, bytes_accessed=48 * B),
    )(x, w_t, b)

    # (1, B) -> (B, 1): same row-major ordering, metadata-only reshape.
    return out.reshape(B, 1)


def reference_forward(x, w_t, b):
    return jax.nn.sigmoid(x @ w_t + b[0])


def _check(y, y_ref, B, tag):
    assert y.shape == (B, 1), f"{tag}: bad shape {y.shape}"
    assert jnp.allclose(y, y_ref, atol=1e-5, rtol=1e-5), f"mismatch vs reference ({tag})"


if __name__ == "__main__":
    key = jax.random.PRNGKey(0)
    k_x, k_w, k_b, k_x2, k_x3 = jax.random.split(key, 5)

    D = INPUT_SIZE

    # torch.nn.Linear init: U(-1/sqrt(D), 1/sqrt(D)).  Torch weight is (1, D);
    # we keep it transposed as (D, 1) for the kernel.
    bound = 1.0 / jnp.sqrt(jnp.float32(D))
    w_t = jax.random.uniform(k_w, (D, 1), jnp.float32, minval=-bound, maxval=bound)
    b = jax.random.uniform(k_b, (1,), jnp.float32, minval=-bound, maxval=bound)

    # Small case (single tiny block).
    B = 8
    x = jax.random.normal(k_x, (B, D), jnp.float32)
    y = jax.block_until_ready(lr_forward(x, w_t, b))
    _check(y, reference_forward(x, w_t, b), B, "B=8")

    # Two full blocks (exercises the multi-step / 2-TensorCore path).
    B2 = 2560
    x2 = jax.random.normal(k_x2, (B2, D), jnp.float32)
    y2 = jax.block_until_ready(lr_forward(x2, w_t, b))
    _check(y2, reference_forward(x2, w_t, b), B2, "B=2560")

    # Ragged last block (B not a multiple of the tile) with no jnp.pad.
    B3 = 2000
    x3 = jax.random.normal(k_x3, (B3, D), jnp.float32)
    y3 = jax.block_until_ready(lr_forward(x3, w_t, b))
    _check(y3, reference_forward(x3, w_t, b), B3, "B=2000")

    print("KERNEL_OK")
</pallas_src>

<mosaic_0001>
module attributes {stable_mosaic.version = 11 : i64} {
  func.func @lr_kernel(%arg0: i32, %arg1: memref<8x11xf32, #tpu.memory_space<vmem>>, %arg2: memref<11x1xf32, #tpu.memory_space<vmem>>, %arg3: memref<1xf32, #tpu.memory_space<smem>>, %arg4: memref<1x8xf32, #tpu.memory_space<vmem>>) attributes {dimension_semantics = [#tpu.dimension_semantics<parallel>], iteration_bounds = array<i64: 1>, scalar_prefetch = 0 : i64, scratch_operands = 0 : i64, tpu.core_type = #tpu.core_type<tc>, window_params = [{transform_indices = @transform_0, window_bounds = array<i64: 8, 11>}, {pipeline_mode = #tpu.pipeline_mode<synchronous>, transform_indices = @transform_1, window_bounds = array<i64: 11, 1>}, {transform_indices = @transform_2, window_bounds = array<i64: 1>}, {transform_indices = @transform_3, window_bounds = array<i64: 1, 8>}]} {
    %c0 = arith.constant 0 : index
    %c0_0 = arith.constant 0 : index
    %0 = vector.load %arg1[%c0, %c0_0] : memref<8x11xf32, #tpu.memory_space<vmem>>, vector<8x11xf32>
    %1 = tpu.transpose %0, [1, 0] : vector<8x11xf32> -> vector<11x8xf32>
    %c0_1 = arith.constant 0 : index
    %c0_2 = arith.constant 0 : index
    %2 = vector.load %arg2[%c0_1, %c0_2] : memref<11x1xf32, #tpu.memory_space<vmem>>, vector<11x1xf32>
    %3 = vector.broadcast %2 : vector<11x1xf32> to vector<11x8xf32>
    %4 = arith.mulf %1, %3 : vector<11x8xf32>
    %cst = arith.constant dense<0.000000e+00> : vector<8xf32>
    %5 = vector.multi_reduction <add>, %4, %cst [0] : vector<11x8xf32> to vector<8xf32>
    %6 = vector.shape_cast %5 : vector<8xf32> to vector<1x8xf32>
    %c0_3 = arith.constant 0 : index
    %7 = memref.load %arg3[%c0_3] : memref<1xf32, #tpu.memory_space<smem>>
    %8 = vector.broadcast %7 : f32 to vector<1x8xf32>
    %9 = arith.addf %6, %8 : vector<1x8xf32>
    %cst_4 = arith.constant 5.000000e-01 : f32
    %10 = vector.broadcast %cst_4 : f32 to vector<1x8xf32>
    %11 = arith.mulf %10, %9 : vector<1x8xf32>
    %12 = math.tanh %11 : vector<1x8xf32>
    %cst_5 = arith.constant 5.000000e-01 : f32
    %13 = vector.broadcast %cst_5 : f32 to vector<1x8xf32>
    %14 = arith.mulf %13, %12 : vector<1x8xf32>
    %cst_6 = arith.constant 5.000000e-01 : f32
    %15 = vector.broadcast %cst_6 : f32 to vector<1x8xf32>
    %16 = arith.addf %14, %15 : vector<1x8xf32>
    %c0_7 = arith.constant 0 : index
    %c0_8 = arith.constant 0 : index
    %17 = vector.load %arg4[%c0_7, %c0_8] : memref<1x8xf32, #tpu.memory_space<vmem>>, vector<1x8xf32>
    tpu.vector_store %arg4[%c0_7, %c0_8], %16 {strides = array<i32>} : memref<1x8xf32, #tpu.memory_space<vmem>>, vector<1x8xf32>,
    return
  }
  func.func @transform_0(%arg0: i32) -> (i32, i32) {
    %c0_i32 = arith.constant 0 : i32
    %c0_i32_0 = arith.constant 0 : i32
    return %arg0, %c0_i32 : i32, i32
  }
  func.func @transform_1(%arg0: i32) -> (i32, i32) {
    %c0_i32 = arith.constant 0 : i32
    %c0_i32_0 = arith.constant 0 : i32
    %c0_i32_1 = arith.constant 0 : i32
    return %c0_i32, %c0_i32_0 : i32, i32
  }
  func.func @transform_2(%arg0: i32) -> i32 {
    %c0_i32 = arith.constant 0 : i32
    %c0_i32_0 = arith.constant 0 : i32
    return %c0_i32 : i32
  }
  func.func @transform_3(%arg0: i32) -> (i32, i32) {
    %c0_i32 = arith.constant 0 : i32
    %c0_i32_0 = arith.constant 0 : i32
    return %c0_i32, %arg0 : i32, i32
  }
}

</mosaic_0001>

<bundles_post_ra>
// kernel: lr_forward.1
= control target key start
LH: loop header
LB: loop body
LE: loop exit
PB: predicated region body
PF: predicated region fallthrough
CT: control target
= control target key end

     0   :  { %v125_v2 = vmov 0   ;;  %s162_s0 = inlined_call_operand.vmem [shape: f32[8,11], index: 0, kind: input, shape index: {}]   ;;  %s163_s1 = inlined_call_operand.vmem [shape: f32[11,1], index: 1, kind: input, shape index: {}]   ;;  %s164_s2 = inlined_call_operand.<no memory space> [shape: f32[1], index: 2, kind: input, shape index: {}]   ;;  %s165_s3 = inlined_call_operand.hbm [shape: f32[1,8], index: 3, kind: output, shape index: {}]  }
   0x1   :  { %v16_v0 = vld [vmem:[%s162_s0] sm:$0xff]  ;;  %100 = vset.pattern.permute.xlu0 %v125_v2 }
   0x2   :  { %v49_v1 = vld [vmem:[%s163_s1] sm:$0xff]  ;;  %17 = vxpose.xlu1.b32.start.end [1/1] (short) (narrow) %v16_v0, 16 }
   0x3   :  { %9 = vsyncpa [#allocation4], 0  ;;  %53 = vperm.xlu0 %100, %v49_v1   ;;  %v50_v3 = vld [vmem:[%s163_s1 + $0x8] sm:$0x7]  ;;  %vm63_vm0 = vcmask 64512   ;;  %vm65_vm1 = vcmask 59392   ;;  %v75_v18 = vstv %s164_s2 }
   0x4   :  { %s126_s1 = smov [#allocation3]   ;;  %vm81_vm2 = vcmask 57344  }
   0x5   :  { %s89_s19 = sshll.u32 %s126_s1, 4  ;;  %s90_s19 = int_to_ptr.vmem [resolvable:$true] %s89_s19 }
   0x6   :  { %s103_s20 = scalar_lea.vmem %s90_s19, 16  ;;  %s107_s21 = scalar_lea.vmem %s90_s19, 32 }
   0x7   :  { %58 = vperm.xlu0 %100, %v50_v3   ;;  %p104_p0 = scmp.ne.s32.totalorder %s90_s19, %s103_s20  ;;  %p108_p1 = scmp.lt.s32.totalorder %s90_s19, %s90_s19 }
   0x8   :  { %p109_p2 = scmp.lt.s32.totalorder %s107_s21, %s103_s20 }
   0xa   :  { %p110_p3 = por %p109_p2, %p108_p1 }
   0xc   :  { %p111_p4 = pnand %p110_p3, %p104_p0 }
  0x7e   :  { %v54_v4 = vpop.permute.xlu0 %53  ;;  %v33_v5 = vpop.trf.xlu1 }
  0x7f   :  { %v61_v6 = vmul.f32 %v54_v4, %v33_v5 }
  0x81   :  { %v64_v10 = vsel %vm63_vm0, %v61_v6, 0.0 }
  0x82   :  { %v59_v7 = vpop.permute.xlu0 %58  ;;  %v34_v8 = vpop.trf.xlu1 }
  0x83   :  { %v62_v9 = vmul.f32 %v59_v7, %v34_v8 }
  0x85   :  { %v66_v11 = vsel %vm65_vm1, %v62_v9, 0.0 }
  0x86   :  { %v67_v12 = vadd.f32 %v66_v11, %v64_v10 }
  0x88   :  { %v68_v13 = vrot.slane %v67_v12, 4 }
  0x8a   :  { %v69_v14 = vadd.f32 %v68_v13, %v67_v12 }
  0x8c   :  { %v70_v15 = vrot.slane %v69_v14, 2 }
  0x8e   :  { %v71_v16 = vadd.f32 %v70_v15, %v69_v14 }
  0x90   :  { %v72_v17 = vrot.slane %v71_v16, 1 }
  0x92   :  { %v73_v19 = vadd.f32 %v72_v17, %v71_v16 }
  0x94   :  { %v76_v20 = vadd.f32 %v75_v18, %v73_v19 }
  0x96   :  { %v77_v21 = vmul.f32 0.5, %v76_v20 }
  0x98   :  { %101 = vtanh.f32 %v77_v21 }
  0xa5   :  { %v102_v22 = vpop.eup %101 }
  0xa6   :  { %v79_v23 = vmul.f32 0.5, %v102_v22 }
  0xa8   :  { %v80_v24 = vadd.f32 0.5, %v79_v23 }
  0xaa   :  { %82 = vst.msk [vmem:[#allocation3] sm:$0x1] %vm81_vm2, %v80_v24 }
  0xab   :  { %114 = shalt.err (!%p111_p4)
}
  0xac   :  { %92 = dma.vmem_to_hbm [thread:$0]  %s90_s19, 16, %s165_s3, [#allocation4]  }
  0xad   :  { %123 = dma.done.wait [#allocation4], 16  }
  0xae   :  { %124 = vsyncadd [#allocation4], 4294967280 }
  0xaf   :  { %96 = vsyncpa [#allocation4], 1 }

</bundles_post_ra>
